<compile_context>
chip_gen: v6e
topology: v6e:2x2x1
jax: 0.10.0
libtpu: 0.0.40
codegen_flags: <defaults>
</compile_context>

<pallas_src>
import math

import jax
import jax.numpy as jnp
import numpy as np
from jax.experimental import pallas as pl
from jax.experimental.pallas import tpu as pltpu


# ------------------------------ linear layer -------------------------------

def _linear_kernel(x_ref, w_ref, b_ref, o_ref):
    o_ref[...] = (jnp.dot(x_ref[...], w_ref[...],
                          preferred_element_type=jnp.float32) + b_ref[...])


def linear_pallas(x, w, b, *, row_tile=256):
    N, F = x.shape
    E = w.shape[1]
    rt = min(row_tile, N)
    return pl.pallas_call(
        _linear_kernel,
        out_shape=jax.ShapeDtypeStruct((N, E), jnp.float32),
        grid=(pl.cdiv(N, rt),),
        in_specs=[
            pl.BlockSpec((rt, F), lambda i: (i, 0)),
            pl.BlockSpec((F, E), lambda i: (0, 0)),
            pl.BlockSpec((1, E), lambda i: (0, 0)),
        ],
        out_specs=pl.BlockSpec((rt, E), lambda i: (i, 0)),
        compiler_params=pltpu.CompilerParams(
            dimension_semantics=("parallel",)),
    )(x, w, b)


# --------------------- transposed conv (k=4, s=2, p=1) ---------------------
#
# out[2m+r, 2n+c] = sum_{dr,dc in {0,1}} xpad[m+r+dr, n+c+dc] . W[3-r-2dr, 3-c-2dc]
# where xpad is the input zero-padded by 1.  We build a tap-stacked, padded
# activation xq[b, i, j, (2dr+dc)*Cin:+Cin] = xpad[b, i+dr, j+dc, :] in VMEM,
# so each parity (r, c) is a single slice + single (M, 4*Cin)x(4*Cin, Cout)
# matmul against a pre-stacked weight.


def stack_convt_weight(w):
    """HWIO (4,4,Cin,Cout) ConvTranspose2d weight -> (4, 4*Cin, Cout).

    Row 2*r + c is the parity class; channel slot k = 2*dr + dc holds
    w[3 - r - 2*dr, 3 - c - 2*dc]."""
    blocks = []
    for r in (0, 1):
        for c in (0, 1):
            taps = [w[3 - r - 2 * dr, 3 - c - 2 * dc]
                    for dr in (0, 1) for dc in (0, 1)]
            blocks.append(jnp.concatenate(taps, axis=0))      # (4*Cin, Cout)
    return jnp.stack(blocks, axis=0)                          # (4, 4*Cin, Cout)


def make_convt_kernel(NB, H, W, Cin, Cout, use_norm, use_act, use_bias,
                      eps=1e-3):
    Kc = 4 * Cin

    def kernel(x_ref, w_ref, b_ref, g_ref, be_ref, o_ref, xq_ref):
        # Build padded, tap-stacked activation in VMEM scratch (pad fused
        # in-kernel: zero the scratch, write the input block into the four
        # shifted channel slots).  Scratch is rewritten fully every grid step
        # so the "parallel" batch axis is safe on multi-core parts.
        xq_ref[...] = jnp.zeros_like(xq_ref)
        xv = x_ref[...]
        xq_ref[:, 1:H + 1, 1:W + 1, 0 * Cin:1 * Cin] = xv   # (dr, dc) = (0, 0)
        xq_ref[:, 1:H + 1, 0:W,     1 * Cin:2 * Cin] = xv   # (0, 1)
        xq_ref[:, 0:H,     1:W + 1, 2 * Cin:3 * Cin] = xv   # (1, 0)
        xq_ref[:, 0:H,     0:W,     3 * Cin:4 * Cin] = xv   # (1, 1)

        # hoist small broadcast operands out of the parity loop
        bias = b_ref[...] if use_bias else None
        gamma = g_ref[...] if use_norm else None
        beta = be_ref[...] if use_norm else None

        for r in (0, 1):
            for c in (0, 1):
                patch = xq_ref[:, r:r + H, c:c + W, :]
                patch = patch.reshape(NB * H * W, Kc).astype(jnp.bfloat16)
                # single K-stacked MXU matmul per parity, f32 accumulation
                acc = jnp.dot(patch, w_ref[2 * r + c],
                              preferred_element_type=jnp.float32)
                if use_bias:
                    acc = acc + bias
                if use_norm:  # ImgChLayerNorm == LayerNorm over channels (f32)
                    mu = jnp.mean(acc, axis=-1, keepdims=True)
                    var = jnp.maximum(
                        jnp.mean(acc * acc, axis=-1, keepdims=True) - mu * mu,
                        0.0)
                    acc = (acc - mu) * jax.lax.rsqrt(var + eps)
                    acc = acc * gamma + beta
                if use_act:  # ELU(alpha=1), f32
                    acc = jnp.where(acc > 0, acc,
                                    jnp.exp(jnp.minimum(acc, 0.0)) - 1.0)
                o_ref[:, 2 * r + c] = acc.reshape(NB, H * W, Cout)

    return kernel


def convt_layer_pallas(x, wstack, b, g, be, *, H, W, Cin, Cout,
                       use_norm, use_act, use_bias, batch_block=8):
    N = x.shape[0]
    NB = min(batch_block, N)
    kernel = make_convt_kernel(NB, H, W, Cin, Cout, use_norm, use_act,
                               use_bias)
    out = pl.pallas_call(
        kernel,
        out_shape=jax.ShapeDtypeStruct((N, 4, H * W, Cout), jnp.float32),
        grid=(pl.cdiv(N, NB),),
        in_specs=[
            pl.BlockSpec((NB, H, W, Cin), lambda n: (n, 0, 0, 0)),
            pl.BlockSpec((4, 4 * Cin, Cout), lambda n: (0, 0, 0)),
            pl.BlockSpec((1, Cout), lambda n: (0, 0)),
            pl.BlockSpec((1, Cout), lambda n: (0, 0)),
            pl.BlockSpec((1, Cout), lambda n: (0, 0)),
        ],
        out_specs=pl.BlockSpec((NB, 4, H * W, Cout),
                               lambda n: (n, 0, 0, 0)),
        scratch_shapes=[pltpu.VMEM((NB, H + 1, W + 1, 4 * Cin), jnp.float32)],
        compiler_params=pltpu.CompilerParams(
            dimension_semantics=("parallel",)),
    )(x, wstack, b, g, be)
    # pixel shuffle (tiny XLA glue): (N, 2*2, H*W, C) -> (N, 2H, 2W, C)
    out = out.reshape(N, 2, 2, H, W, Cout)
    out = jnp.transpose(out, (0, 3, 1, 4, 2, 5)).reshape(N, 2 * H, 2 * W, Cout)
    return out


# ------------------------------- ConvDecoder --------------------------------

def calc_same_pad(k, s, d):
    val = d * (k - 1) - s + 1
    pad = math.ceil(val / 2)
    outpad = pad * 2 - val
    return pad, outpad


class ConvDecoderPallas:
    def __init__(self, feat_size, shape=(3, 16, 16), depth=16, minres=4,
                 cnn_sigmoid=False, batch_block=8, key=jax.random.PRNGKey(0)):
        self._shape = shape
        self._minres = minres
        self._cnn_sigmoid = cnn_sigmoid
        self._batch_block = batch_block
        layer_num = int(np.log2(shape[1]) - np.log2(minres))
        out_ch = minres ** 2 * depth * 2 ** (layer_num - 1)
        self._embed_size = out_ch

        pad, outpad = calc_same_pad(k=4, s=2, d=1)
        assert (pad, outpad) == (1, 0)

        keys = jax.random.split(key, 2 + 2 * layer_num)
        # TODO(synk): tools.weight_init / tools.uniform_weight_init are
        # external; replaced with deterministic scaled-normal init.
        self.lin_w = (jax.random.normal(keys[0], (feat_size, out_ch),
                                        jnp.float32) / np.sqrt(feat_size))
        self.lin_b = jax.random.normal(keys[1], (1, out_ch),
                                       jnp.float32) * 0.01

        self.layers = []
        in_dim = out_ch // minres ** 2
        out_dim = in_dim // 2
        for i in range(layer_num):
            bias, use_norm, use_act = False, True, True
            if i == layer_num - 1:
                out_dim = shape[0]
                use_act = False
                bias = True
                use_norm = False
            if i != 0:
                in_dim = 2 ** (layer_num - (i - 1) - 2) * depth
            # weight stored HWIO: w[kh, kw, ci, co] == torch W[ci, co, kh, kw];
            # rounded through bf16 so kernel (bf16 MXU inputs) and the f32
            # reference share identical effective weights.
            w = (jax.random.normal(keys[2 + 2 * i], (4, 4, in_dim, out_dim),
                                   jnp.float32) / np.sqrt(16 * in_dim))
            w = w.astype(jnp.bfloat16).astype(jnp.float32)
            wstack = stack_convt_weight(w).astype(jnp.bfloat16)
            b = (jax.random.normal(keys[3 + 2 * i], (1, out_dim),
                                   jnp.float32) * 0.01
                 if bias else jnp.zeros((1, out_dim), jnp.float32))
            self.layers.append(dict(
                w=w, wstack=wstack, b=b,
                g=jnp.ones((1, out_dim), jnp.float32),
                be=jnp.zeros((1, out_dim), jnp.float32),
                in_dim=in_dim, out_dim=out_dim,
                norm=use_norm, act=use_act, bias=bias))
            in_dim = out_dim
            out_dim //= 2

    def __call__(self, features):
        B, T, F = features.shape
        N = B * T
        x = linear_pallas(features.reshape(N, F).astype(jnp.float32),
                          self.lin_w, self.lin_b)
        C0 = self._embed_size // self._minres ** 2
        x = x.reshape(N, self._minres, self._minres, C0)       # NHWC
        H = W = self._minres
        for L in self.layers:
            x = convt_layer_pallas(
                x, L["wstack"], L["b"], L["g"], L["be"],
                H=H, W=W, Cin=L["in_dim"], Cout=L["out_dim"],
                use_norm=L["norm"], use_act=L["act"], use_bias=L["bias"],
                batch_block=self._batch_block)
            H, W = 2 * H, 2 * W
        mean = x.reshape(B, T, self._shape[1], self._shape[2], self._shape[0])
        if self._cnn_sigmoid:
            mean = jax.nn.sigmoid(mean)
        else:
            mean = mean + 0.5
        return mean


# ----------------------- plain-JAX reference (check) -----------------------

def reference_forward(dec, features):
    B, T, F = features.shape
    N = B * T
    x = features.reshape(N, F) @ dec.lin_w + dec.lin_b
    C0 = dec._embed_size // dec._minres ** 2
    x = x.reshape(N, dec._minres, dec._minres, C0)
    for L in dec.layers:
        w_rot = L["w"][::-1, ::-1, :, :]
        y = jax.lax.conv_general_dilated(
            x, w_rot, window_strides=(1, 1), padding=[(2, 2), (2, 2)],
            lhs_dilation=(2, 2), rhs_dilation=(1, 1),
            dimension_numbers=("NHWC", "HWIO", "NHWC"))
        if L["bias"]:
            y = y + L["b"].reshape(1, 1, 1, -1)
        if L["norm"]:
            mu = y.mean(-1, keepdims=True)
            var = ((y - mu) ** 2).mean(-1, keepdims=True)
            y = (y - mu) / jnp.sqrt(var + 1e-3)
            y = y * L["g"].reshape(1, 1, 1, -1) + L["be"].reshape(1, 1, 1, -1)
        if L["act"]:
            y = jnp.where(y > 0, y, jnp.exp(jnp.minimum(y, 0.0)) - 1.0)
        x = y
    mean = x.reshape(B, T, dec._shape[1], dec._shape[2], dec._shape[0]) + 0.5
    return mean


if __name__ == "__main__":
    key = jax.random.PRNGKey(0)
    kparam, kfeat = jax.random.split(key)

    feat_size = 32
    dec = ConvDecoderPallas(feat_size, shape=(3, 16, 16), depth=16, minres=4,
                            key=kparam)
    features = jax.random.normal(kfeat, (2, 2, feat_size), jnp.float32)

    out = dec(features)
    out = jax.block_until_ready(out)
    assert out.shape == (2, 2, 16, 16, 3), out.shape

    ref = reference_forward(dec, features)
    # bf16 MXU inputs (f32 accumulation) vs. f32 reference -> ~1e-2 tolerance.
    np.testing.assert_allclose(np.asarray(out), np.asarray(ref),
                               rtol=2e-2, atol=2e-2)
    print("KERNEL_OK")
</pallas_src>

<mosaic_0001>
module attributes {stable_mosaic.version = 11 : i64} {
  func.func @_linear_kernel(%arg0: i32, %arg1: memref<4x32xf32, #tpu.memory_space<vmem>>, %arg2: memref<32x512xf32, #tpu.memory_space<vmem>>, %arg3: memref<1x512xf32, #tpu.memory_space<vmem>>, %arg4: memref<4x512xf32, #tpu.memory_space<vmem>>) attributes {dimension_semantics = [#tpu.dimension_semantics<parallel>], iteration_bounds = array<i64: 1>, scalar_prefetch = 0 : i64, scratch_operands = 0 : i64, tpu.core_type = #tpu.core_type<tc>, window_params = [{transform_indices = @transform_0, window_bounds = array<i64: 4, 32>}, {pipeline_mode = #tpu.pipeline_mode<synchronous>, transform_indices = @transform_1, window_bounds = array<i64: 32, 512>}, {pipeline_mode = #tpu.pipeline_mode<synchronous>, transform_indices = @transform_2, window_bounds = array<i64: 1, 512>}, {transform_indices = @transform_3, window_bounds = array<i64: 4, 512>}]} {
    %c0 = arith.constant 0 : index
    %c0_0 = arith.constant 0 : index
    %0 = vector.load %arg1[%c0, %c0_0] : memref<4x32xf32, #tpu.memory_space<vmem>>, vector<4x32xf32>
    %c0_1 = arith.constant 0 : index
    %c0_2 = arith.constant 0 : index
    %1 = vector.load %arg2[%c0_1, %c0_2] : memref<32x512xf32, #tpu.memory_space<vmem>>, vector<32x512xf32>
    %cst = arith.constant dense<0.000000e+00> : vector<4x512xf32>
    %2 = tpu.matmul %0, %1, %cst {dimension_numbers = #tpu.dot_dimension_numbers<[1], [0], [0], [1], [0, 0, 1, 1], [], []>} : vector<4x32xf32>, vector<32x512xf32>, vector<4x512xf32> -> vector<4x512xf32>
    %c0_3 = arith.constant 0 : index
    %c0_4 = arith.constant 0 : index
    %3 = vector.load %arg3[%c0_3, %c0_4] : memref<1x512xf32, #tpu.memory_space<vmem>>, vector<1x512xf32>
    %4 = vector.broadcast %3 : vector<1x512xf32> to vector<4x512xf32>
    %5 = arith.addf %2, %4 : vector<4x512xf32>
    %c0_5 = arith.constant 0 : index
    %c0_6 = arith.constant 0 : index
    %6 = vector.load %arg4[%c0_5, %c0_6] : memref<4x512xf32, #tpu.memory_space<vmem>>, vector<4x512xf32>
    tpu.vector_store %arg4[%c0_5, %c0_6], %5 {strides = array<i32>} : memref<4x512xf32, #tpu.memory_space<vmem>>, vector<4x512xf32>,
    return
  }
  func.func @transform_0(%arg0: i32) -> (i32, i32) {
    %c0_i32 = arith.constant 0 : i32
    %c0_i32_0 = arith.constant 0 : i32
    return %arg0, %c0_i32 : i32, i32
  }
  func.func @transform_1(%arg0: i32) -> (i32, i32) {
    %c0_i32 = arith.constant 0 : i32
    %c0_i32_0 = arith.constant 0 : i32
    %c0_i32_1 = arith.constant 0 : i32
    return %c0_i32, %c0_i32_0 : i32, i32
  }
  func.func @transform_2(%arg0: i32) -> (i32, i32) {
    %c0_i32 = arith.constant 0 : i32
    %c0_i32_0 = arith.constant 0 : i32
    %c0_i32_1 = arith.constant 0 : i32
    return %c0_i32, %c0_i32_0 : i32, i32
  }
  func.func @transform_3(%arg0: i32) -> (i32, i32) {
    %c0_i32 = arith.constant 0 : i32
    %c0_i32_0 = arith.constant 0 : i32
    return %arg0, %c0_i32 : i32, i32
  }
}

</mosaic_0001>

<bundles_post_ra>
// kernel: tpu_custom_call.1
= control target key start
LH: loop header
LB: loop body
LE: loop exit
PB: predicated region body
PF: predicated region fallthrough
CT: control target
= control target key end

     0   :  { %8 = vsyncpa [#allocation3], 0  ;;  %s397_s0 = inlined_call_operand.hbm [shape: f32[4,32], index: 0, kind: input, shape index: {}]   ;;  %s398_s1 = inlined_call_operand.hbm [shape: f32[32,512], index: 1, kind: input, shape index: {}]   ;;  %s399_s2 = inlined_call_operand.hbm [shape: f32[1,512], index: 2, kind: input, shape index: {}]   ;;  %s400_s3 = inlined_call_operand.hbm [shape: f32[4,512], index: 3, kind: output, shape index: {}]  }
   0x1   :  { %9 = vsyncpa [#allocation6], 0 }
   0x2   :  { %10 = vsyncpa [#allocation4], 0  ;;  %s358_s12 = smov [#allocation5]  }
   0x3   :  { %s26_s13 = sshll.u32 %s358_s12, 4  ;;  %s27_s13 = int_to_ptr.vmem [resolvable:$true] %s26_s13 }
   0x4   :  { %s280_s14 = scalar_lea.vmem %s27_s13, 2048  ;;  %p285_p1 = scmp.lt.s32.totalorder %s27_s13, %s27_s13 }
   0x5   :  { %p281_p0 = scmp.ne.s32.totalorder %s27_s13, %s280_s14  ;;  %p286_p2 = scmp.lt.s32.totalorder %s280_s14, %s280_s14 }
   0x7   :  { %p287_p3 = por %p286_p2, %p285_p1 }
   0x9   :  { %p288_p4 = pnand %p287_p3, %p281_p0 }
   0xb   :  { %291 = shalt.err (!%p288_p4)
}
   0xc   :  { %s359_s15 = smov 512   ;;  %s360_s16 = smov 32  }
   0xd   :  { %32 = dma.hbm_to_vmem [thread:$0]  %s398_s1, 2048, %s27_s13, [#allocation6], %s359_s15, %s359_s15, %s360_s16  }
   0xe   :  { %s361_s19 = smov [#allocation2]   ;;  %s362_s21 = smov [#allocation7]  }
   0xf   :  { %s17_s20 = sshll.u32 %s361_s19, 4  ;;  %s39_s22 = sshll.u32 %s362_s21, 4  ;;  %s18_s20 = int_to_ptr.vmem [resolvable:$true] %s17_s20  ;;  %s40_s22 = int_to_ptr.vmem [resolvable:$true] %s39_s22 }
  0x10   :  { %s300_s23 = scalar_lea.vmem %s18_s20, 64  ;;  %p305_p6 = scmp.lt.s32.totalorder %s18_s20, %s18_s20 }
  0x11   :  { %p301_p5 = scmp.ne.s32.totalorder %s18_s20, %s300_s23  ;;  %p306_p7 = scmp.lt.s32.totalorder %s300_s23, %s300_s23 }
  0x13   :  { %p307_p8 = por %p306_p7, %p305_p6 }
  0x15   :  { %p308_p9 = pnand %p307_p8, %p301_p5 }
  0x17   :  { %311 = shalt.err (!%p308_p9)
}
  0x18   :  { %20 = dma.hbm_to_vmem [thread:$0]  %s397_s0, 64, %s18_s20, [#allocation3]  }
  0x19   :  { %s320_s26 = scalar_lea.vmem %s40_s22, 64  ;;  %p325_p11 = scmp.lt.s32.totalorder %s40_s22, %s40_s22 }
  0x1a   :  { %p321_p10 = scmp.ne.s32.totalorder %s40_s22, %s320_s26  ;;  %p326_p12 = scmp.lt.s32.totalorder %s320_s26, %s320_s26 }
  0x1c   :  { %p327_p13 = por %p326_p12, %p325_p11 }
  0x1e   :  { %p328_p0 = pnand %p327_p13, %p321_p10 }
  0x20   :  { %331 = shalt.err (!%p328_p0)
}
  0x21   :  { %42 = dma.hbm_to_vmem [thread:$0]  %s399_s2, 64, %s40_s22, [#allocation6]  }
  0x22   :  { %352 = dma.done.wait [#allocation3], 64  }
  0x23   :  { %353 = vsyncadd [#allocation3], 4294967232 }
  0x24   :  { %354 = dma.done.wait [#allocation6], 2112  }
  0x25   :  { %355 = vsyncadd [#allocation6], 4294965184  ;;  %v363_v0 = vmov 0.0   ;;  %v66_v1 = vld [vmem:[#allocation5 + $0x68] sm:$0xff]  ;;  %v68_v2 = vld [vmem:[#allocation5 + $0x78] sm:$0xff]  ;;  %vm91_vm0 = vcmask 261120   ;;  %v71_v18 = vlaneseq }
  0x26   :  { %159 = vmatprep.mubr.f32.mxu0 %v363_v0  ;;  %230 = vmatprep.mubr.f32.mxu1 %v363_v0  ;;  %v65_v3 = vld [vmem:[#allocation5 + $0x60] sm:$0xff]  ;;  %v67_v4 = vld [vmem:[#allocation5 + $0x70] sm:$0xff]  ;;  %v62_v5 = vld [vmem:[#allocation5 + $0x48] sm:$0xff]  ;;  %s364_s0 = smov [#allocation8]  }
  0x27   :  { %119 = vmatprep.subr.mxu0 %v66_v1  ;;  %190 = vmatprep.subr.mxu1 %v68_v2  ;;  %v64_v6 = vld [vmem:[#allocation5 + $0x58] sm:$0xff]  ;;  %v61_v7 = vld [vmem:[#allocation5 + $0x40] sm:$0xff]  ;;  %v63_v8 = vld [vmem:[#allocation5 + $0x50] sm:$0xff]  ;;  %v72_v19 = vshrl.u32 %v71_v18, 7  ;;  %s253_s2 = sshll.u32 %s364_s0, 4  ;;  %s254_s2 = int_to_ptr.vmem [resolvable:$true] %s253_s2 }
  0x28   :  { %120 = vmatpush1.msra.mxu0 %v65_v3  ;;  %191 = vmatpush1.msra.mxu1 %v67_v4  ;;  %v58_v9 = vld [vmem:[#allocation5 + $0x28] sm:$0xff]  ;;  %v60_v10 = vld [vmem:[#allocation5 + $0x38] sm:$0xff]  ;;  %v57_v11 = vld [vmem:[#allocation5 + $0x20] sm:$0xff]  ;;  %s332_s28 = scalar_lea.vmem %s254_s2, 256  ;;  %p337_p2 = scmp.lt.s32.totalorder %s254_s2, %s254_s2 }
  0x29   :  { %121 = vmatprep.subr.mxu0 %v62_v5  ;;  %192 = vmatprep.subr.mxu1 %v64_v6  ;;  %v59_v12 = vld [vmem:[#allocation5 + $0x30] sm:$0xff]  ;;  %v54_v13 = vld [vmem:[#allocation5 + $0x8] sm:$0xff]  ;;  %v56_v14 = vld [vmem:[#allocation5 + $0x18] sm:$0xff]  ;;  %v73_v20 = vsub.s32 0, %v72_v19  ;;  %v81_v21 = vsub.s32 2, %v72_v19  ;;  %v77_v22 = vsub.s32 1, %v72_v19  ;;  %p333_p1 = scmp.ne.s32.totalorder %s254_s2, %s332_s28  ;;  %p338_p3 = scmp.lt.s32.totalorder %s332_s28, %s332_s28 }
  0x2a   :  { %122 = vmatpush1.msra.mxu0 %v61_v7  ;;  %193 = vmatpush1.msra.mxu1 %v63_v8  ;;  %v53_v15 = vld [vmem:[#allocation5] sm:$0xff]  ;;  %v55_v16 = vld [vmem:[#allocation5 + $0x10] sm:$0xff]  ;;  %v52_v17 = vld [vmem:[#allocation2] sm:$0xf]  ;;  %v85_v23 = vsub.s32 3, %v72_v19 }
  0x2b   :  { %123 = vmatprep.subr.mxu0 %v58_v9  ;;  %194 = vmatprep.subr.mxu1 %v60_v10  ;;  %v69_v24 = vld [vmem:[#allocation7] sm:$0xf]  ;;  %p339_p4 = por %p338_p3, %p337_p2 }
  0x2c   :  { %124 = vmatpush1.msra.mxu0 %v57_v11  ;;  %195 = vmatpush1.msra.mxu1 %v59_v12  ;;  %v74_v25 = vrot.slane %v69_v24, %v73_v20  ;;  %v82_v26 = vrot.slane %v69_v24, %v81_v21  ;;  %v78_v27 = vrot.slane %v69_v24, %v77_v22 }
  0x2d   :  { %125 = vmatprep.subr.mxu0 %v54_v13  ;;  %196 = vmatprep.subr.mxu1 %v56_v14  ;;  %v86_v28 = vrot.slane %v69_v24, %v85_v23  ;;  %p340_p5 = pnand %p339_p4, %p333_p1 }
  0x2e   :  { %126 = vmatpush1.msra.mxu0 %v53_v15  ;;  %197 = vmatpush1.msra.mxu1 %v55_v16 }
  0x2f   :  { %263 = vmatmul.mubr.msk.f32.vlgmr.msra.gmra.mxu0 %vm91_vm0, %v52_v17  ;;  %264 = vmatmul.mubr.msk.f32.vlgmr.msra.gmra.mxu1 %vm91_vm0, %v52_v17 }
  0xef   :  { %v161_v29 = vpop.f32.mrf.mxu0  ;;  %v232_v30 = vpop.f32.mrf.mxu1 }
  0xf0   :  { %v162_v33 = vadd.f32 %v161_v29, %v74_v25  ;;  %v233_v34 = vadd.f32 %v232_v30, %v82_v26 }
  0xf1   :  { %v163_v31 = vpop.f32.mrf.mxu0  ;;  %v234_v32 = vpop.f32.mrf.mxu1 }
  0xf2   :  { %v164_v35 = vadd.f32 %v163_v31, %v78_v27  ;;  %v235_v36 = vadd.f32 %v234_v32, %v86_v28 }
  0xf4   :  { %v241_v37 = vcombine.low %v162_v33, %v164_v35  ;;  %v242_v38 = vcombine.low %v233_v34, %v235_v36 }
  0xf6   :  { %245 = vst [vmem:[#allocation8] sm:$0xff] %v241_v37  ;;  %246 = vst [vmem:[#allocation8 + $0x8] sm:$0xff] %v242_v38 }
  0xf7   :  { %343 = shalt.err (!%p340_p5)
}
  0xf8   :  { %256 = dma.vmem_to_hbm [thread:$0]  %s254_s2, 256, %s400_s3, [#allocation4]  }
  0xf9   :  { %356 = dma.done.wait [#allocation4], 256  }
  0xfa   :  { %357 = vsyncadd [#allocation4], 4294967040 }
  0xfb   :  { %260 = vsyncpa [#allocation3], 1 }
  0xfc   :  { %261 = vsyncpa [#allocation6], 1 }
  0xfd   :  { %262 = vsyncpa [#allocation4], 1 }

</bundles_post_ra>
